<compile_context>
chip_gen: v7x
topology: tpu7x:2x2x1
jax: 0.10.0
libtpu: 0.0.40
codegen_flags: <defaults>
</compile_context>

<pallas_src>
import jax
import jax.numpy as jnp
from jax import lax
from jax.experimental import pallas as pl
from jax.experimental.pallas import tpu as pltpu


def _round_up(x, m):
    return (x + m - 1) // m * m


_TARGET_BLOCK_ELEMS = 256 * 1024  # ~1 MiB f32 per input block; 2 in x 2 buf = 4 MiB
                                  # (safe within even v5e's 16 MiB scoped VMEM default).


def _make_kernel(tn, td, rows, d, r_ragged, d_ragged):
    """Kernel factory closing over static tile sizes and raggedness flags."""

    def kernel(p_ref, t_ref, out_ref, spp_ref, stt_ref, spt_ref):
        # Hoisted: never call pl.program_id / pl.num_programs inside pl.when.
        i = pl.program_id(0)          # row-tile index
        k = pl.program_id(1)          # D reduction step
        nk = pl.num_programs(1)

        @pl.when(k == 0)
        def _init():
            spp_ref[...] = jnp.zeros_like(spp_ref)
            stt_ref[...] = jnp.zeros_like(stt_ref)
            spt_ref[...] = jnp.zeros_like(spt_ref)

        # ReLU + cast to f32 in-register (inputs may be bf16 in HBM).
        p = jnp.maximum(p_ref[...].astype(jnp.float32), 0.0)
        t = jnp.maximum(t_ref[...].astype(jnp.float32), 0.0)

        if d_ragged:
            # Last D block extends past the row end: mask garbage columns.
            col = k * td + lax.broadcasted_iota(jnp.int32, (tn, td), 1)
            cmask = col < d
            p = jnp.where(cmask, p, 0.0)
            t = jnp.where(cmask, t, 0.0)

        # Streaming per-row partial sums over the feature (D) dimension.
        spp_ref[...] += jnp.sum(p * p, axis=1, keepdims=True)
        stt_ref[...] += jnp.sum(t * t, axis=1, keepdims=True)
        spt_ref[...] += jnp.sum(p * t, axis=1, keepdims=True)

        if r_ragged:
            row = i * tn + lax.broadcasted_iota(jnp.int32, (tn, 1), 0)
            rmask = row < rows
        else:
            rmask = None

        @pl.when(k == nk - 1)
        def _finalize():
            # rsqrt(spp)*rsqrt(stt) (EUP) avoids overflow of spp*stt for huge D.
            inv = lax.rsqrt(spp_ref[...]) * lax.rsqrt(stt_ref[...])
            loss = 2.0 - 2.0 * spt_ref[...] * inv
            if rmask is not None:
                # Mask rows that exist only as tile padding; real all-zero rows
                # keep their NaN (0/0), matching torch semantics.
                loss = jnp.where(rmask, loss, 0.0)
            out_ref[...] = loss

    return kernel


def _per_row_losses(p2d, t2d, target_block_elems=_TARGET_BLOCK_ELEMS):
    """Per-row loss (R, 1) for one FPN level given (R, D) flattened features."""
    r, d = p2d.shape

    # Row tile: whole (small) batch if tiny; otherwise a multiple of 8 giving
    # at least 2 row tiles so both v7x TensorCores get work on the parallel axis.
    if r <= 8:
        tn = r                                   # full extent (any value allowed)
    else:
        tn = min(256, _round_up(pl.cdiv(r, 2), 8))
    r_tiles = pl.cdiv(r, tn)
    r_ragged = (r % tn) != 0

    # D tile: full row if it fits the per-block budget, else near-equal
    # lane-dense (multiple-of-128) chunks.  Reduction axis goes last in the grid.
    td_budget = max(128, (target_block_elems // tn) // 128 * 128)
    if d <= td_budget:
        td, d_steps = d, 1                       # full extent, single step
    else:
        d_steps = pl.cdiv(d, td_budget)
        td = _round_up(pl.cdiv(d, d_steps), 128)
        d_steps = pl.cdiv(d, td)
    d_ragged = (d % td) != 0

    kernel = _make_kernel(tn, td, r, d, r_ragged, d_ragged)

    # Blocks are ~1 MiB/input -> default double-buffering fits every generation's
    # scoped VMEM default; pipeline_mode=pl.Buffered(3) is a possible sweep knob.
    return pl.pallas_call(
        kernel,
        out_shape=jax.ShapeDtypeStruct((r, 1), jnp.float32),
        grid_spec=pltpu.PrefetchScalarGridSpec(
            num_scalar_prefetch=0,
            grid=(r_tiles, d_steps),
            in_specs=[
                pl.BlockSpec((tn, td), lambda i, k: (i, k)),
                pl.BlockSpec((tn, td), lambda i, k: (i, k)),
            ],
            out_specs=pl.BlockSpec((tn, 1), lambda i, k: (i, 0)),
            scratch_shapes=[
                pltpu.VMEM((tn, 1), jnp.float32),
                pltpu.VMEM((tn, 1), jnp.float32),
                pltpu.VMEM((tn, 1), jnp.float32),
            ],
        ),
        compiler_params=pltpu.CompilerParams(
            # Row tiles independent -> parallel (megacore); D is the reduction.
            dimension_semantics=("parallel", "arbitrary"),
        ),
    )(p2d, t2d)


def feat_imitate_l2_loss(preds, targets, weight=None, avg_factor=None,
                         reduction_override=None, loss_weight=1.0,
                         target_block_elems=_TARGET_BLOCK_ELEMS):
    """JAX/Pallas equivalent of FeatImitate_L2Loss.forward.

    `weight`, `avg_factor`, `reduction_override` are accepted for API parity
    but — as in the reference module — do not affect the returned scalar.
    """
    if not isinstance(preds, (list, tuple)):
        preds = [preds]
        targets = [targets]

    total = jnp.float32(0.0)
    for pred, tgt in zip(preds, targets):
        n = pred.shape[0]
        # reshape(N, -1) of a contiguous array is metadata-only (no HBM pass).
        per_row = _per_row_losses(pred.reshape(n, -1), tgt.reshape(n, -1),
                                  target_block_elems)
        total = total + jnp.sum(per_row) / jnp.float32(n)

    return jnp.float32(loss_weight) * total / jnp.float32(len(preds))


def _reference_jax(preds, targets, loss_weight=1.0):
    """Pure-JAX reference in the direct (torch) form for the correctness check."""
    if not isinstance(preds, (list, tuple)):
        preds = [preds]
        targets = [targets]
    total = jnp.float32(0.0)
    for pred, tgt in zip(preds, targets):
        n = pred.shape[0]
        p = jnp.maximum(pred.reshape(n, -1).astype(jnp.float32), 0.0)
        t = jnp.maximum(tgt.reshape(n, -1).astype(jnp.float32), 0.0)
        p = p / jnp.linalg.norm(p, axis=1, keepdims=True)
        t = t / jnp.linalg.norm(t, axis=1, keepdims=True)
        total = total + jnp.sum((p - t) ** 2) / n
    return loss_weight * (total / len(preds))


if __name__ == "__main__":
    key = jax.random.PRNGKey(0)
    k1, k2, k3, k4, k5, k6 = jax.random.split(key, 6)

    # FPN-style feature levels (list input), NCHW, small shapes.
    # Third level has D = 300 (not a multiple of 128) to exercise masking.
    preds = [
        jax.random.normal(k1, (2, 4, 16, 16), dtype=jnp.float32),   # D = 1024
        jax.random.normal(k2, (2, 4, 8, 8), dtype=jnp.float32),     # D = 256
        jax.random.normal(k3, (2, 3, 10, 10), dtype=jnp.float32),   # D = 300
    ]
    targets = [
        jax.random.normal(k4, (2, 4, 16, 16), dtype=jnp.float32),
        jax.random.normal(k5, (2, 4, 8, 8), dtype=jnp.float32),
        jax.random.normal(k6, (2, 3, 10, 10), dtype=jnp.float32),
    ]

    loss_weight = 1.0  # module default (no learned parameters)

    ref = jax.block_until_ready(_reference_jax(preds, targets, loss_weight=loss_weight))

    # Default path: each level's rows fit in a single lane-dense D block.
    loss = jax.block_until_ready(
        feat_imitate_l2_loss(preds, targets, loss_weight=loss_weight))
    assert jnp.allclose(loss, ref, rtol=1e-4, atol=1e-6), (loss, ref)

    # Tiny D budget: forces multi-step streaming accumulation and the
    # ragged-last-D-block (column masking) path.
    loss_tiled = jax.block_until_ready(
        feat_imitate_l2_loss(preds, targets, loss_weight=loss_weight,
                             target_block_elems=256))
    assert jnp.allclose(loss_tiled, ref, rtol=1e-4, atol=1e-6), (loss_tiled, ref)

    print("KERNEL_OK")
</pallas_src>

<mosaic_0001>
module attributes {stable_mosaic.version = 11 : i64} {
  func.func @kernel(%arg0: i32, %arg1: i32, %arg2: memref<2x1024xf32, #tpu.memory_space<vmem>>, %arg3: memref<2x1024xf32, #tpu.memory_space<vmem>>, %arg4: memref<2x1xf32, #tpu.memory_space<vmem>>, %arg5: memref<2x1xf32, #tpu.memory_space<vmem>>, %arg6: memref<2x1xf32, #tpu.memory_space<vmem>>, %arg7: memref<2x1xf32, #tpu.memory_space<vmem>>) attributes {dimension_semantics = [#tpu.dimension_semantics<parallel>, #tpu.dimension_semantics<arbitrary>], iteration_bounds = array<i64: 1, 1>, scalar_prefetch = 0 : i64, scratch_operands = 3 : i64, tpu.core_type = #tpu.core_type<tc>, window_params = [{transform_indices = @transform_0, window_bounds = array<i64: 2, 1024>}, {transform_indices = @transform_1, window_bounds = array<i64: 2, 1024>}, {transform_indices = @transform_2, window_bounds = array<i64: 2, 1>}]} {
    %c0_i32 = arith.constant 0 : i32
    %0 = arith.cmpi eq, %arg1, %c0_i32 : i32
    %1 = arith.extui %0 : i1 to i32
    %c0_i32_0 = arith.constant 0 : i32
    %2 = arith.cmpi ne, %1, %c0_i32_0 : i32
    scf.if %2 {
      %cst_22 = arith.constant 0.000000e+00 : f32
      %30 = vector.broadcast %cst_22 : f32 to vector<2x1xf32>
      %c0_23 = arith.constant 0 : index
      %c0_24 = arith.constant 0 : index
      %31 = vector.load %arg5[%c0_23, %c0_24] : memref<2x1xf32, #tpu.memory_space<vmem>>, vector<2x1xf32>
      tpu.vector_store %arg5[%c0_23, %c0_24], %30 {strides = array<i32>} : memref<2x1xf32, #tpu.memory_space<vmem>>, vector<2x1xf32>,
      %cst_25 = arith.constant 0.000000e+00 : f32
      %32 = vector.broadcast %cst_25 : f32 to vector<2x1xf32>
      %c0_26 = arith.constant 0 : index
      %c0_27 = arith.constant 0 : index
      %33 = vector.load %arg6[%c0_26, %c0_27] : memref<2x1xf32, #tpu.memory_space<vmem>>, vector<2x1xf32>
      tpu.vector_store %arg6[%c0_26, %c0_27], %32 {strides = array<i32>} : memref<2x1xf32, #tpu.memory_space<vmem>>, vector<2x1xf32>,
      %cst_28 = arith.constant 0.000000e+00 : f32
      %34 = vector.broadcast %cst_28 : f32 to vector<2x1xf32>
      %c0_29 = arith.constant 0 : index
      %c0_30 = arith.constant 0 : index
      %35 = vector.load %arg7[%c0_29, %c0_30] : memref<2x1xf32, #tpu.memory_space<vmem>>, vector<2x1xf32>
      tpu.vector_store %arg7[%c0_29, %c0_30], %34 {strides = array<i32>} : memref<2x1xf32, #tpu.memory_space<vmem>>, vector<2x1xf32>,
    } else {
    }
    %c0 = arith.constant 0 : index
    %c0_1 = arith.constant 0 : index
    %3 = vector.load %arg2[%c0, %c0_1] : memref<2x1024xf32, #tpu.memory_space<vmem>>, vector<2x1024xf32>
    %cst = arith.constant 0.000000e+00 : f32
    %4 = vector.broadcast %cst : f32 to vector<2x1024xf32>
    %5 = arith.maximumf %3, %4 : vector<2x1024xf32>
    %c0_2 = arith.constant 0 : index
    %c0_3 = arith.constant 0 : index
    %6 = vector.load %arg3[%c0_2, %c0_3] : memref<2x1024xf32, #tpu.memory_space<vmem>>, vector<2x1024xf32>
    %cst_4 = arith.constant 0.000000e+00 : f32
    %7 = vector.broadcast %cst_4 : f32 to vector<2x1024xf32>
    %8 = arith.maximumf %6, %7 : vector<2x1024xf32>
    %c0_5 = arith.constant 0 : index
    %c0_6 = arith.constant 0 : index
    %9 = vector.load %arg5[%c0_5, %c0_6] : memref<2x1xf32, #tpu.memory_space<vmem>>, vector<2x1xf32>
    %10 = arith.mulf %5, %5 : vector<2x1024xf32>
    %cst_7 = arith.constant dense<0.000000e+00> : vector<2xf32>
    %11 = vector.multi_reduction <add>, %10, %cst_7 [1] : vector<2x1024xf32> to vector<2xf32>
    %12 = vector.shape_cast %11 : vector<2xf32> to vector<2x1xf32>
    %13 = arith.addf %9, %12 : vector<2x1xf32>
    %c0_8 = arith.constant 0 : index
    %c0_9 = arith.constant 0 : index
    %14 = vector.load %arg5[%c0_8, %c0_9] : memref<2x1xf32, #tpu.memory_space<vmem>>, vector<2x1xf32>
    tpu.vector_store %arg5[%c0_8, %c0_9], %13 {strides = array<i32>} : memref<2x1xf32, #tpu.memory_space<vmem>>, vector<2x1xf32>,
    %c0_10 = arith.constant 0 : index
    %c0_11 = arith.constant 0 : index
    %15 = vector.load %arg6[%c0_10, %c0_11] : memref<2x1xf32, #tpu.memory_space<vmem>>, vector<2x1xf32>
    %16 = arith.mulf %8, %8 : vector<2x1024xf32>
    %cst_12 = arith.constant dense<0.000000e+00> : vector<2xf32>
    %17 = vector.multi_reduction <add>, %16, %cst_12 [1] : vector<2x1024xf32> to vector<2xf32>
    %18 = vector.shape_cast %17 : vector<2xf32> to vector<2x1xf32>
    %19 = arith.addf %15, %18 : vector<2x1xf32>
    %c0_13 = arith.constant 0 : index
    %c0_14 = arith.constant 0 : index
    %20 = vector.load %arg6[%c0_13, %c0_14] : memref<2x1xf32, #tpu.memory_space<vmem>>, vector<2x1xf32>
    tpu.vector_store %arg6[%c0_13, %c0_14], %19 {strides = array<i32>} : memref<2x1xf32, #tpu.memory_space<vmem>>, vector<2x1xf32>,
    %c0_15 = arith.constant 0 : index
    %c0_16 = arith.constant 0 : index
    %21 = vector.load %arg7[%c0_15, %c0_16] : memref<2x1xf32, #tpu.memory_space<vmem>>, vector<2x1xf32>
    %22 = arith.mulf %5, %8 : vector<2x1024xf32>
    %cst_17 = arith.constant dense<0.000000e+00> : vector<2xf32>
    %23 = vector.multi_reduction <add>, %22, %cst_17 [1] : vector<2x1024xf32> to vector<2xf32>
    %24 = vector.shape_cast %23 : vector<2xf32> to vector<2x1xf32>
    %25 = arith.addf %21, %24 : vector<2x1xf32>
    %c0_18 = arith.constant 0 : index
    %c0_19 = arith.constant 0 : index
    %26 = vector.load %arg7[%c0_18, %c0_19] : memref<2x1xf32, #tpu.memory_space<vmem>>, vector<2x1xf32>
    tpu.vector_store %arg7[%c0_18, %c0_19], %25 {strides = array<i32>} : memref<2x1xf32, #tpu.memory_space<vmem>>, vector<2x1xf32>,
    %c0_i32_20 = arith.constant 0 : i32
    %27 = arith.cmpi eq, %arg1, %c0_i32_20 : i32
    %28 = arith.extui %27 : i1 to i32
    %c0_i32_21 = arith.constant 0 : i32
    %29 = arith.cmpi ne, %28, %c0_i32_21 : i32
    scf.if %29 {
      %c0_22 = arith.constant 0 : index
      %c0_23 = arith.constant 0 : index
      %30 = vector.load %arg5[%c0_22, %c0_23] : memref<2x1xf32, #tpu.memory_space<vmem>>, vector<2x1xf32>
      %31 = math.rsqrt %30 : vector<2x1xf32>
      %c0_24 = arith.constant 0 : index
      %c0_25 = arith.constant 0 : index
      %32 = vector.load %arg6[%c0_24, %c0_25] : memref<2x1xf32, #tpu.memory_space<vmem>>, vector<2x1xf32>
      %33 = math.rsqrt %32 : vector<2x1xf32>
      %34 = arith.mulf %31, %33 : vector<2x1xf32>
      %c0_26 = arith.constant 0 : index
      %c0_27 = arith.constant 0 : index
      %35 = vector.load %arg7[%c0_26, %c0_27] : memref<2x1xf32, #tpu.memory_space<vmem>>, vector<2x1xf32>
      %cst_28 = arith.constant 2.000000e+00 : f32
      %36 = vector.broadcast %cst_28 : f32 to vector<2x1xf32>
      %37 = arith.mulf %36, %35 : vector<2x1xf32>
      %38 = arith.mulf %37, %34 : vector<2x1xf32>
      %cst_29 = arith.constant 2.000000e+00 : f32
      %39 = vector.broadcast %cst_29 : f32 to vector<2x1xf32>
      %40 = arith.subf %39, %38 : vector<2x1xf32>
      %c0_30 = arith.constant 0 : index
      %c0_31 = arith.constant 0 : index
      %41 = vector.load %arg4[%c0_30, %c0_31] : memref<2x1xf32, #tpu.memory_space<vmem>>, vector<2x1xf32>
      tpu.vector_store %arg4[%c0_30, %c0_31], %40 {strides = array<i32>} : memref<2x1xf32, #tpu.memory_space<vmem>>, vector<2x1xf32>,
    } else {
    }
    return
  }
  func.func @transform_0(%arg0: i32, %arg1: i32) -> (i32, i32) {
    %c0_i32 = arith.constant 0 : i32
    return %arg0, %arg1 : i32, i32
  }
  func.func @transform_1(%arg0: i32, %arg1: i32) -> (i32, i32) {
    %c0_i32 = arith.constant 0 : i32
    return %arg0, %arg1 : i32, i32
  }
  func.func @transform_2(%arg0: i32, %arg1: i32) -> (i32, i32) {
    %c0_i32 = arith.constant 0 : i32
    %c0_i32_0 = arith.constant 0 : i32
    return %arg0, %c0_i32 : i32, i32
  }
}

</mosaic_0001>

<bundles_post_ra>
// kernel: tpu_custom_call.1
= control target key start
LH: loop header
LB: loop body
LE: loop exit
PB: predicated region body
PF: predicated region fallthrough
CT: control target
= control target key end

     0   :  { %7 = vsyncpa [#allocation6], 0  ;;  %s417_s0 = inlined_call_operand.hbm [shape: f32[2,1024], index: 0, kind: input, shape index: {}]   ;;  %s418_s1 = inlined_call_operand.hbm [shape: f32[2,1024], index: 1, kind: input, shape index: {}]   ;;  %s419_s2 = inlined_call_operand.vmem [shape: f32[2,1], index: 2, kind: output, shape index: {}]  }
   0x1   :  { %8 = vsyncpa [#allocation8], 0  ;;  %s326_s9 = smov [#allocation5]   ;;  %s327_s11 = smov [#allocation7]  }
   0x2   :  { %s15_s10 = sshll.u32 %s326_s9, 4  ;;  %s25_s12 = sshll.u32 %s327_s11, 4  ;;  %s16_s10 = int_to_ptr.vmem [resolvable:$true] %s15_s10  ;;  %s26_s12 = int_to_ptr.vmem [resolvable:$true] %s25_s12 }
   0x3   :  { %s278_s15 = scalar_lea.hbm %s417_s0, 256 }
   0x4   :  { %p279_p0 = scmp.ne.s32.totalorder %s417_s0, %s278_s15  ;;  %p282_p1 = scmp.lt.u32.totalorder %s278_s15, %s417_s0 }
   0x6   :  { %p284_p2 = pnand %p282_p1, %p279_p0 }
   0x8   :  { %287 = shalt.err (!%p284_p2)
}
   0x9   :  { %s288_s20 = scalar_lea.vmem %s16_s10, 256  ;;  %p293_p4 = scmp.lt.s32.totalorder %s16_s10, %s16_s10 }
   0xa   :  { %p289_p3 = scmp.ne.s32.totalorder %s16_s10, %s288_s20  ;;  %p294_p5 = scmp.lt.s32.totalorder %s288_s20, %s288_s20 }
   0xc   :  { %p295_p6 = por %p294_p5, %p293_p4 }
   0xe   :  { %p296_p7 = pnand %p295_p6, %p289_p3 }
  0x10   :  { %299 = shalt.err (!%p296_p7)
}
  0x11   :  { %18 = dma.hbm_to_vmem [thread:$0]  %s417_s0, 256, %s16_s10, [#allocation6]  }
  0x12   :  { %s300_s25 = scalar_lea.hbm %s418_s1, 256 }
  0x13   :  { %p301_p8 = scmp.ne.s32.totalorder %s418_s1, %s300_s25  ;;  %p304_p9 = scmp.lt.u32.totalorder %s300_s25, %s418_s1 }
  0x15   :  { %p306_p10 = pnand %p304_p9, %p301_p8 }
  0x17   :  { %309 = shalt.err (!%p306_p10)
}
  0x18   :  { %s310_s30 = scalar_lea.vmem %s26_s12, 256  ;;  %p315_p12 = scmp.lt.s32.totalorder %s26_s12, %s26_s12 }
  0x19   :  { %p311_p11 = scmp.ne.s32.totalorder %s26_s12, %s310_s30  ;;  %p316_p13 = scmp.lt.s32.totalorder %s310_s30, %s310_s30 }
  0x1b   :  { %p317_p0 = por %p316_p13, %p315_p12 }
  0x1d   :  { %p318_p1 = pnand %p317_p0, %p311_p11 }
  0x1f   :  { %321 = shalt.err (!%p318_p1)
}
  0x20   :  { %28 = dma.hbm_to_vmem [thread:$0]  %s418_s1, 256, %s26_s12, [#allocation8]  }
  0x21   :  { %322 = dma.done.wait [#allocation6], 256  }
  0x22   :  { %323 = vsyncadd [#allocation6], 4294967040 }
  0x23   :  { %324 = dma.done.wait [#allocation8], 256  }
  0x24   :  { %325 = vsyncadd [#allocation8], 4294967040  ;;  %v60_v0 = vlaneseq  ;;  %vm39_vm0 = vcmask 1024   ;;  %v328_v1 = vmov 1983009808   ;;  %v329_v3 = vmov 0.0  }
  0x25   :  { %v58_v2 = vunpack.c.l.s4 %v328_v1  ;;  %40 = vst.msk [vmem:[#allocation2] sm:$0x3] %vm39_vm0, %v329_v3  ;;  %41 = vst.msk [vmem:[#allocation3] sm:$0x3] %vm39_vm0, %v329_v3  ;;  %v43_v6 = vld [vmem:[#allocation5] sm:$0xff]  ;;  %v44_v7 = vld [vmem:[#allocation5 + $0x8] sm:$0xff] }
  0x26   :  { %42 = vst.msk [vmem:[#allocation4] sm:$0x3] %vm39_vm0, %v329_v3  ;;  %v61_v5 = vshrl.u32 %v60_v0, 7  ;;  %v47_v8 = vld [vmem:[#allocation7] sm:$0xff]  ;;  %v45_v9 = vmax.f32 %v43_v6, 0.0  ;;  %v46_v10 = vmax.f32 %v44_v7, 0.0 }
  0x27   :  { %v59_v4 = vunpack.c.0.s8 %v58_v2  ;;  %v48_v12 = vld [vmem:[#allocation7 + $0x8] sm:$0xff]  ;;  %v49_v13 = vmax.f32 %v47_v8, 0.0  ;;  %vm98_vm1 = vcmask 1041408  }
  0x28   :  { %v50_v14 = vmax.f32 %v48_v12, 0.0  ;;  %v52_v15 = vmul.f32 %v45_v9, %v45_v9  ;;  %v53_v16 = vmul.f32 %v46_v10, %v46_v10 }
  0x29   :  { %v372_v11 = vsub.s32 %v59_v4, %v61_v5  ;;  %v120_v17 = vmul.f32 %v49_v13, %v49_v13  ;;  %v186_v40 = vmul.f32 %v49_v13, %v45_v9 }
  0x2a   :  { %v56_v18 = vcombine.high %v52_v15, %v52_v15  ;;  %v73_v20 = vcombine.high %v53_v16, %v53_v16  ;;  %v121_v21 = vmul.f32 %v50_v14, %v50_v14  ;;  %v187_v41 = vmul.f32 %v50_v14, %v46_v10 }
  0x2b   :  { %v63_v19 = vrot.slane %v52_v15, %v372_v11  ;;  %v124_v22 = vcombine.high %v120_v17, %v120_v17  ;;  %v131_v23 = vrot.slane %v120_v17, %v372_v11  ;;  %v80_v26 = vrot.slane %v53_v16, %v372_v11 }
  0x2c   :  { %v70_v24 = vrot.slane %v56_v18, %v372_v11  ;;  %v141_v30 = vcombine.high %v121_v21, %v121_v21  ;;  %v87_v32 = vrot.slane %v73_v20, %v372_v11  ;;  %v148_v37 = vrot.slane %v121_v21, %v372_v11 }
  0x2d   :  { %v71_v25 = vcombine.high %v63_v19, %v63_v19  ;;  %v99_v27 = vsel %vm98_vm1, %v63_v19, 0.0  ;;  %v138_v28 = vrot.slane %v124_v22, %v372_v11  ;;  %v139_v29 = vcombine.high %v131_v23, %v131_v23 }
  0x2e   :  { %v72_v31 = vcombine.high %v70_v24, %v70_v24  ;;  %v102_v34 = vsel %vm98_vm1, %v70_v24, 0.0  ;;  %v88_v38 = vcombine.high %v80_v26, %v80_v26  ;;  %v166_v43 = vsel %vm98_vm1, %v131_v23, 0.0 }
  0x2f   :  { %v100_v33 = vsel %vm98_vm1, %v71_v25, 0.0  ;;  %v140_v36 = vcombine.high %v138_v28, %v138_v28  ;;  %v167_v44 = vsel %vm98_vm1, %v139_v29, 0.0  ;;  %v169_v45 = vsel %vm98_vm1, %v138_v28, 0.0 }
  0x30   :  { %v101_v35 = vadd.f32 %v100_v33, %v99_v27  ;;  %v104_v39 = vsel %vm98_vm1, %v72_v31, 0.0  ;;  %v89_v46 = vcombine.high %v87_v32, %v87_v32  ;;  %v106_v47 = vsel %vm98_vm1, %v80_v26, 0.0 }
  0x31   :  { %v155_v48 = vrot.slane %v141_v30, %v372_v11  ;;  %v168_v49 = vadd.f32 %v167_v44, %v166_v43  ;;  %v156_v51 = vcombine.high %v148_v37, %v148_v37  ;;  %v171_v52 = vsel %vm98_vm1, %v140_v36, 0.0 }
  0x32   :  { %v103_v42 = vadd.f32 %v102_v34, %v101_v35  ;;  %v190_v53 = vcombine.high %v186_v40, %v186_v40  ;;  %v108_v54 = vsel %vm98_vm1, %v88_v38, 0.0  ;;  %v110_v55 = vsel %vm98_vm1, %v87_v32, 0.0  ;;  %v51_v32 = vld [vmem:[#allocation2] sm:$0x3]  ;;  %v119_v35 = vld [vmem:[#allocation3] sm:$0x3] }
  0x33   :  { %v170_v56 = vadd.f32 %v169_v45, %v168_v49  ;;  %v197_v57 = vrot.slane %v186_v40, %v372_v11  ;;  %v173_v59 = vsel %vm98_vm1, %v148_v37, 0.0  ;;  %v207_v61 = vcombine.high %v187_v41, %v187_v41  ;;  %v185_v38 = vld [vmem:[#allocation4] sm:$0x3] }
  0x34   :  { %v105_v50 = vadd.f32 %v104_v39, %v103_v42  ;;  %v204_v60 = vrot.slane %v190_v53, %v372_v11  ;;  %v214_v0 = vrot.slane %v187_v41, %v372_v11  ;;  %v157_v3 = vcombine.high %v155_v48, %v155_v48 }
  0x35   :  { %v172_v62 = vadd.f32 %v171_v52, %v170_v56  ;;  %v205_v63 = vcombine.high %v197_v57, %v197_v57  ;;  %v232_v1 = vsel %vm98_vm1, %v197_v57, 0.0  ;;  %v175_v4 = vsel %vm98_vm1, %v156_v51, 0.0 }
  0x36   :  { %v107_v58 = vadd.f32 %v106_v47, %v105_v50  ;;  %v206_v5 = vcombine.high %v204_v60, %v204_v60  ;;  %v112_v6 = vsel %vm98_vm1, %v89_v46, 0.0  ;;  %v235_v9 = vsel %vm98_vm1, %v204_v60, 0.0 }
  0x37   :  { %v174_v7 = vadd.f32 %v173_v59, %v172_v62  ;;  %v233_v8 = vsel %vm98_vm1, %v205_v63, 0.0  ;;  %v177_v12 = vsel %vm98_vm1, %v155_v48, 0.0  ;;  %v221_v15 = vrot.slane %v207_v61, %v372_v11 }
  0x38   :  { %v109_v2 = vadd.f32 %v108_v54, %v107_v58  ;;  %v234_v13 = vadd.f32 %v233_v8, %v232_v1  ;;  %v222_v16 = vcombine.high %v214_v0, %v214_v0  ;;  %v237_v17 = vsel %vm98_vm1, %v206_v5, 0.0 }
  0x39   :  { %v176_v14 = vadd.f32 %v175_v4, %v174_v7  ;;  %v179_v19 = vsel %vm98_vm1, %v157_v3, 0.0  ;;  %v239_v22 = vsel %vm98_vm1, %v214_v0, 0.0  ;;  %v223_v25 = vcombine.high %v221_v15, %v221_v15 }
  0x3a   :  { %v111_v10 = vadd.f32 %v110_v55, %v109_v2  ;;  %v236_v20 = vadd.f32 %v235_v9, %v234_v13  ;;  %v241_v26 = vsel %vm98_vm1, %v222_v16, 0.0  ;;  %v243_v28 = vsel %vm98_vm1, %v221_v15, 0.0 }
  0x3b   :  { %v178_v21 = vadd.f32 %v177_v12, %v176_v14  ;;  %v245_v29 = vsel %vm98_vm1, %v223_v25, 0.0 }
  0x3c   :  { %v113_v18 = vadd.f32 %v112_v6, %v111_v10  ;;  %v238_v23 = vadd.f32 %v237_v17, %v236_v20 }
  0x3d   :  { %v180_v24 = vadd.f32 %v179_v19, %v178_v21 }
  0x3e   :  { %114 = vadd.xlane.f32.xlu0 %v113_v18  ;;  %v240_v27 = vadd.f32 %v239_v22, %v238_v23 }
  0x40   :  { %v242_v11 = vadd.f32 %v241_v26, %v240_v27 }
  0x42   :  { %181 = vadd.xlane.f32.xlu0 %v180_v24  ;;  %v244_v30 = vadd.f32 %v243_v28, %v242_v11 }
  0x44   :  { %v246_v31 = vadd.f32 %v245_v29, %v244_v30 }
  0x46   :  { %247 = vadd.xlane.f32.xlu1 %v246_v31 }
  0xcb   :  { %v115_v33 = vpop.xlane.xlu0 %114 }
  0xcc   :  { %v116_v34 = vadd.f32 %v115_v33, %v51_v32 }
  0xce   :  { %118 = vst.msk [vmem:[#allocation2] sm:$0x3] %vm39_vm0, %v116_v34 }
  0xcf   :  { %v182_v36 = vpop.xlane.xlu0 %181 }
  0xd0   :  { %v183_v37 = vadd.f32 %v182_v36, %v119_v35 }
  0xd2   :  { %184 = vst.msk [vmem:[#allocation3] sm:$0x3] %vm39_vm0, %v183_v37 }
  0xd3   :  { %v248_v39 = vpop.xlane.xlu1 %247 }
  0xd4   :  { %v249_v41 = vadd.f32 %v248_v39, %v185_v38 }
  0xd5   :  { %v254_v40 = vld [vmem:[#allocation2] sm:$0x3] }
  0xd6   :  { %250 = vst.msk [vmem:[#allocation4] sm:$0x3] %vm39_vm0, %v249_v41  ;;  %274 = vrsqrt.f32 %v254_v40 }
  0xd9   :  { %v256_v42 = vld [vmem:[#allocation3] sm:$0x3] }
  0xda   :  { %276 = vrsqrt.f32 %v256_v42 }
  0xdd   :  { %v259_v43 = vld [vmem:[#allocation4] sm:$0x3] }
  0xde   :  { %v260_v45 = vmul.f32 2.0, %v259_v43 }
  0xe0   :  { %v275_v44 = vpop.eup %274 }
  0xe4   :  { %v277_v46 = vpop.eup %276 }
  0xe5   :  { %v258_v47 = vmul.f32 %v277_v46, %v275_v44 }
  0xe7   :  { %v261_v48 = vmul.f32 %v260_v45, %v258_v47 }
  0xe9   :  { %v262_v49 = vsub.f32 2.0, %v261_v48 }
  0xeb   :  { %263 = vst.msk [vmem:[%s419_s2] sm:$0x3] %vm39_vm0, %v262_v49 }
  0xec   :  { %268 = vsyncpa [#allocation6], 1 }
  0xed   :  { %269 = vsyncpa [#allocation8], 1 }

</bundles_post_ra>
